<compile_context>
chip_gen: v7x
topology: tpu7x:2x2x1
jax: 0.10.0
libtpu: 0.0.40
codegen_flags: <defaults>
</compile_context>

<pallas_src>
import math

import jax
import jax.numpy as jnp
from jax.experimental import pallas as pl
from jax.experimental.pallas import tpu as pltpu


def _round_up(x, m):
    return -(-x // m) * m


# ------------------------------- Pallas kernel ------------------------------
def _timestep_embedder_kernel(t_ref, freqs_ref, w1_ref, b1_ref, w2_ref, b2_ref,
                              o_ref):
    cdt = w1_ref.dtype
    # Sinusoidal embedding: args = t * freqs (f32); emb = [cos | sin] in bf16.
    args = t_ref[...] * freqs_ref[...]                                # (bt, half) f32
    emb = jnp.concatenate([jnp.cos(args).astype(cdt),
                           jnp.sin(args).astype(cdt)], axis=-1)       # (bt, Fe) bf16

    # MLP: Linear -> SiLU -> Linear (bf16 operands, f32 accumulation on MXU).
    h = jnp.dot(emb, w1_ref[...], preferred_element_type=jnp.float32)
    h = h + b1_ref[...].astype(jnp.float32)
    # Exact SiLU: x * sigmoid(x), sigmoid(x) = 0.5 * (1 + tanh(x / 2))  (EUP).
    h = h * (0.5 * (1.0 + jnp.tanh(0.5 * h)))
    out = jnp.dot(h.astype(w2_ref.dtype), w2_ref[...],
                  preferred_element_type=jnp.float32)
    out = out + b2_ref[...].astype(jnp.float32)
    o_ref[...] = out.astype(o_ref.dtype)


# --------------------------------- wrapper -----------------------------------
def timestep_embedder_forward(params, t, *, max_period=10000,
                              compute_dtype=jnp.bfloat16,
                              out_dtype=jnp.bfloat16,
                              block_b=None):
    """params: {'w1': (Fe,H), 'b1': (H,)|(1,H), 'w2': (H,H), 'b2': (H,)|(1,H)}; t: (B,)."""
    w1 = jnp.asarray(params["w1"])
    b1 = jnp.asarray(params["b1"]).reshape(1, -1)
    w2 = jnp.asarray(params["w2"])
    b2 = jnp.asarray(params["b2"]).reshape(1, -1)
    Fe, H = w1.shape
    # TODO(synk): odd frequency_embedding_size (extra zero column) not implemented.
    assert Fe % 2 == 0, "frequency_embedding_size must be even"
    half = Fe // 2

    # Pad H to a multiple of 128 so the output tile is lane-dense (masked
    # partial stores for narrow H are the biggest measured store-path penalty).
    Hp = _round_up(H, 128)
    ph = Hp - H
    if ph:
        w1 = jnp.pad(w1, ((0, 0), (0, ph)))
        b1 = jnp.pad(b1, ((0, 0), (0, ph)))
        w2 = jnp.pad(w2, ((0, ph), (0, ph)))
        b2 = jnp.pad(b2, ((0, 0), (0, ph)))
    w1 = w1.astype(compute_dtype)
    b1 = b1.astype(compute_dtype)
    w2 = w2.astype(compute_dtype)
    b2 = b2.astype(compute_dtype)

    # Frequencies precomputed once; passed as a grid-invariant (1, half) input.
    freqs = jnp.exp(
        -math.log(max_period) * jnp.arange(half, dtype=jnp.float32) / half
    ).reshape(1, half)

    B = t.shape[0]
    t2 = t.reshape(B, 1).astype(jnp.float32)

    # --- generation-aware tile / VMEM policy ---------------------------------
    try:
        vmem_cap = int(pltpu.get_tpu_info().vmem_capacity_bytes)
    except Exception:
        vmem_cap = 64 * 2**20            # conservative (v7x-sized) fallback
    if block_b is None:
        # ~512 rows on 64 MiB parts (v7x); up to 2048 on 128 MiB parts (v5e/v6e).
        block_b = 2048 if vmem_cap >= 128 * 2**20 else 512

    if B >= 16:
        # At least two programs so the "parallel" batch axis spans both
        # TensorCores on v7x; tiles are multiples of 8 sublanes.
        bt = min(block_b, _round_up(pl.cdiv(B, 2), 8))
    else:
        bt = B                           # single full-extent tile
    pad = (-B) % bt
    if pad:
        t2 = jnp.pad(t2, ((0, pad), (0, 0)))
    Bp = B + pad
    grid = (Bp // bt,)

    # VMEM footprint estimate: weights (assume double-buffered for safety),
    # lane-padded (bt,1)->(bt,128) t tile, double-buffered output, and
    # in-kernel f32/bf16 temporaries (args/cos/sin/emb/h/out).
    w_bytes = (Fe * Hp + Hp * Hp + 2 * Hp) * jnp.dtype(compute_dtype).itemsize \
        + 8 * 128 * 4                                    # padded freqs tile
    t_bytes = 2 * bt * 128 * 4
    o_bytes = 2 * bt * Hp * jnp.dtype(out_dtype).itemsize
    tmp_bytes = bt * (3 * Fe + 3 * Hp) * 4
    est = 2 * w_bytes + t_bytes + o_bytes + tmp_bytes
    vmem_limit = int(min(0.75 * vmem_cap, max(2 * est, 32 * 2**20)))
    compiler_params = pltpu.CompilerParams(
        dimension_semantics=("parallel",), vmem_limit_bytes=vmem_limit)

    out_shape = jax.ShapeDtypeStruct((Bp, Hp), out_dtype)

    def call(single_buffer_invariants):
        def inv_spec(a):
            kw = {}
            if single_buffer_invariants:
                kw["pipeline_mode"] = pl.Buffered(1)     # never changes across steps
            nd = a.ndim
            return pl.BlockSpec(a.shape, lambda i, _nd=nd: (0,) * _nd, **kw)

        return pl.pallas_call(
            _timestep_embedder_kernel,
            out_shape=out_shape,
            grid=grid,
            in_specs=[pl.BlockSpec((bt, 1), lambda i: (i, 0)),
                      inv_spec(freqs),
                      inv_spec(w1), inv_spec(b1), inv_spec(w2), inv_spec(b2)],
            out_specs=pl.BlockSpec((bt, Hp), lambda i: (i, 0)),
            compiler_params=compiler_params,
        )(t2, freqs, w1, b1, w2, b2)

    try:
        out = call(True)
    except Exception:
        # Fallback if this Pallas build rejects Buffered(1) on the outer pipeline.
        out = call(False)

    out = out[:B] if pad else out
    return out[:, :H] if ph else out


# -------------------------------- reference ----------------------------------
def reference_forward(params, t, *, max_period=10000, compute_dtype=jnp.float32):
    """Pure-JAX mirror of the PyTorch module (optionally with bf16 operands)."""
    Fe, H = params["w1"].shape
    half = Fe // 2
    k = jnp.arange(half, dtype=jnp.float32)
    freqs = jnp.exp(-math.log(max_period) * k / half)
    args = t.astype(jnp.float32)[:, None] * freqs[None]
    emb = jnp.concatenate([jnp.cos(args), jnp.sin(args)], axis=-1)
    w1 = params["w1"].astype(compute_dtype)
    b1 = jnp.asarray(params["b1"]).reshape(1, -1).astype(jnp.float32)
    w2 = params["w2"].astype(compute_dtype)
    b2 = jnp.asarray(params["b2"]).reshape(1, -1).astype(jnp.float32)
    h = jnp.dot(emb.astype(compute_dtype), w1,
                preferred_element_type=jnp.float32) + b1
    h = h * jax.nn.sigmoid(h)
    out = jnp.dot(h.astype(compute_dtype), w2,
                  preferred_element_type=jnp.float32) + b2
    return out


if __name__ == "__main__":
    # Small shapes consistent with the module: batch=8, hidden=32, freq=256.
    B, H, Fe = 8, 32, 256
    key = jax.random.PRNGKey(0)
    k1, k2, k3, k4, kt = jax.random.split(key, 5)
    params = {
        "w1": jax.random.normal(k1, (Fe, H), jnp.float32) * 0.02,
        "b1": jax.random.normal(k2, (1, H), jnp.float32) * 0.02,
        "w2": jax.random.normal(k3, (H, H), jnp.float32) * 0.02,
        "b2": jax.random.normal(k4, (1, H), jnp.float32) * 0.02,
    }
    t = jax.random.uniform(kt, (B,), jnp.float32, 0.0, 1000.0)

    out = jax.block_until_ready(timestep_embedder_forward(params, t))
    assert out.shape == (B, H)
    out_f32 = out.astype(jnp.float32)

    # Precision-matched reference (bf16 operands, f32 accumulation): tight tol.
    ref_bf16 = reference_forward(params, t, compute_dtype=jnp.bfloat16)
    err = float(jnp.max(jnp.abs(out_f32 - ref_bf16)))
    assert err < 2e-3, f"bf16-matched max_err={err}"

    # Full-f32 reference (PyTorch-module semantics): loosened tol for bf16 weights.
    ref_f32 = reference_forward(params, t, compute_dtype=jnp.float32)
    err32 = float(jnp.max(jnp.abs(out_f32 - ref_f32)))
    assert err32 < 1e-2, f"f32 max_err={err32}"

    # Exercise the multi-program (>=2 grid steps / v7x megacore) path, still small.
    t_big = jax.random.uniform(kt, (64,), jnp.float32, 0.0, 1000.0)
    out_big = jax.block_until_ready(timestep_embedder_forward(params, t_big))
    assert out_big.shape == (64, H)
    ref_big = reference_forward(params, t_big, compute_dtype=jnp.float32)
    err_big = float(jnp.max(jnp.abs(out_big.astype(jnp.float32) - ref_big)))
    assert err_big < 1e-2, f"multi-tile f32 max_err={err_big}"

    print("KERNEL_OK")
</pallas_src>

<mosaic_0001>
module attributes {stable_mosaic.version = 11 : i64} {
  func.func @_timestep_embedder_kernel(%arg0: i32, %arg1: memref<8x1xf32, #tpu.memory_space<vmem>>, %arg2: memref<1x128xf32, #tpu.memory_space<vmem>>, %arg3: memref<256x128xbf16, #tpu.memory_space<vmem>>, %arg4: memref<1x128xbf16, #tpu.memory_space<vmem>>, %arg5: memref<128x128xbf16, #tpu.memory_space<vmem>>, %arg6: memref<1x128xbf16, #tpu.memory_space<vmem>>, %arg7: memref<8x128xbf16, #tpu.memory_space<vmem>>) attributes {dimension_semantics = [#tpu.dimension_semantics<parallel>], iteration_bounds = array<i64: 1>, scalar_prefetch = 0 : i64, scratch_operands = 0 : i64, tpu.core_type = #tpu.core_type<tc>, window_params = [{transform_indices = @transform_0, window_bounds = array<i64: 8, 1>}, {pipeline_mode = #tpu.pipeline_mode<synchronous>, transform_indices = @transform_1, window_bounds = array<i64: 1, 128>}, {pipeline_mode = #tpu.pipeline_mode<synchronous>, transform_indices = @transform_2, window_bounds = array<i64: 256, 128>}, {pipeline_mode = #tpu.pipeline_mode<synchronous>, transform_indices = @transform_3, window_bounds = array<i64: 1, 128>}, {pipeline_mode = #tpu.pipeline_mode<synchronous>, transform_indices = @transform_4, window_bounds = array<i64: 128, 128>}, {pipeline_mode = #tpu.pipeline_mode<synchronous>, transform_indices = @transform_5, window_bounds = array<i64: 1, 128>}, {transform_indices = @transform_6, window_bounds = array<i64: 8, 128>}]} {
    %c0 = arith.constant 0 : index
    %c0_0 = arith.constant 0 : index
    %0 = vector.load %arg1[%c0, %c0_0] : memref<8x1xf32, #tpu.memory_space<vmem>>, vector<8x1xf32>
    %c0_1 = arith.constant 0 : index
    %c0_2 = arith.constant 0 : index
    %1 = vector.load %arg2[%c0_1, %c0_2] : memref<1x128xf32, #tpu.memory_space<vmem>>, vector<1x128xf32>
    %2 = vector.broadcast %0 : vector<8x1xf32> to vector<8x128xf32>
    %3 = vector.broadcast %1 : vector<1x128xf32> to vector<8x128xf32>
    %4 = arith.mulf %2, %3 : vector<8x128xf32>
    %5 = math.cos %4 : vector<8x128xf32>
    %6 = arith.truncf %5 : vector<8x128xf32> to vector<8x128xbf16>
    %7 = math.sin %4 : vector<8x128xf32>
    %8 = arith.truncf %7 : vector<8x128xf32> to vector<8x128xbf16>
    %9 = tpu.concatenate %6, %8 in 1 : vector<8x128xbf16>, vector<8x128xbf16> -> vector<8x256xbf16>
    %c0_3 = arith.constant 0 : index
    %c0_4 = arith.constant 0 : index
    %10 = vector.load %arg3[%c0_3, %c0_4] : memref<256x128xbf16, #tpu.memory_space<vmem>>, vector<256x128xbf16>
    %cst = arith.constant dense<0.000000e+00> : vector<8x128xf32>
    %11 = tpu.matmul %9, %10, %cst {dimension_numbers = #tpu.dot_dimension_numbers<[1], [0], [0], [1], [0, 0, 1, 1], [], []>} : vector<8x256xbf16>, vector<256x128xbf16>, vector<8x128xf32> -> vector<8x128xf32>
    %c0_5 = arith.constant 0 : index
    %c0_6 = arith.constant 0 : index
    %12 = vector.load %arg4[%c0_5, %c0_6] : memref<1x128xbf16, #tpu.memory_space<vmem>>, vector<1x128xbf16>
    %13 = arith.extf %12 : vector<1x128xbf16> to vector<1x128xf32>
    %14 = vector.broadcast %13 : vector<1x128xf32> to vector<8x128xf32>
    %15 = arith.addf %11, %14 : vector<8x128xf32>
    %cst_7 = arith.constant 5.000000e-01 : f32
    %16 = vector.broadcast %cst_7 : f32 to vector<8x128xf32>
    %17 = arith.mulf %16, %15 : vector<8x128xf32>
    %18 = math.tanh %17 : vector<8x128xf32>
    %cst_8 = arith.constant 1.000000e+00 : f32
    %19 = vector.broadcast %cst_8 : f32 to vector<8x128xf32>
    %20 = arith.addf %19, %18 : vector<8x128xf32>
    %cst_9 = arith.constant 5.000000e-01 : f32
    %21 = vector.broadcast %cst_9 : f32 to vector<8x128xf32>
    %22 = arith.mulf %21, %20 : vector<8x128xf32>
    %23 = arith.mulf %15, %22 : vector<8x128xf32>
    %24 = arith.truncf %23 : vector<8x128xf32> to vector<8x128xbf16>
    %c0_10 = arith.constant 0 : index
    %c0_11 = arith.constant 0 : index
    %25 = vector.load %arg5[%c0_10, %c0_11] : memref<128x128xbf16, #tpu.memory_space<vmem>>, vector<128x128xbf16>
    %cst_12 = arith.constant dense<0.000000e+00> : vector<8x128xf32>
    %26 = tpu.matmul %24, %25, %cst_12 {dimension_numbers = #tpu.dot_dimension_numbers<[1], [0], [0], [1], [0, 0, 1, 1], [], []>} : vector<8x128xbf16>, vector<128x128xbf16>, vector<8x128xf32> -> vector<8x128xf32>
    %c0_13 = arith.constant 0 : index
    %c0_14 = arith.constant 0 : index
    %27 = vector.load %arg6[%c0_13, %c0_14] : memref<1x128xbf16, #tpu.memory_space<vmem>>, vector<1x128xbf16>
    %28 = arith.extf %27 : vector<1x128xbf16> to vector<1x128xf32>
    %29 = vector.broadcast %28 : vector<1x128xf32> to vector<8x128xf32>
    %30 = arith.addf %26, %29 : vector<8x128xf32>
    %31 = arith.truncf %30 : vector<8x128xf32> to vector<8x128xbf16>
    %c0_15 = arith.constant 0 : index
    %c0_16 = arith.constant 0 : index
    %32 = vector.load %arg7[%c0_15, %c0_16] : memref<8x128xbf16, #tpu.memory_space<vmem>>, vector<8x128xbf16>
    tpu.vector_store %arg7[%c0_15, %c0_16], %31 {strides = array<i32>} : memref<8x128xbf16, #tpu.memory_space<vmem>>, vector<8x128xbf16>,
    return
  }
  func.func @transform_0(%arg0: i32) -> (i32, i32) {
    %c0_i32 = arith.constant 0 : i32
    %c0_i32_0 = arith.constant 0 : i32
    return %arg0, %c0_i32 : i32, i32
  }
  func.func @transform_1(%arg0: i32) -> (i32, i32) {
    %c0_i32 = arith.constant 0 : i32
    %c0_i32_0 = arith.constant 0 : i32
    %c0_i32_1 = arith.constant 0 : i32
    return %c0_i32, %c0_i32_0 : i32, i32
  }
  func.func @transform_2(%arg0: i32) -> (i32, i32) {
    %c0_i32 = arith.constant 0 : i32
    %c0_i32_0 = arith.constant 0 : i32
    %c0_i32_1 = arith.constant 0 : i32
    return %c0_i32, %c0_i32_0 : i32, i32
  }
  func.func @transform_3(%arg0: i32) -> (i32, i32) {
    %c0_i32 = arith.constant 0 : i32
    %c0_i32_0 = arith.constant 0 : i32
    %c0_i32_1 = arith.constant 0 : i32
    return %c0_i32, %c0_i32_0 : i32, i32
  }
  func.func @transform_4(%arg0: i32) -> (i32, i32) {
    %c0_i32 = arith.constant 0 : i32
    %c0_i32_0 = arith.constant 0 : i32
    %c0_i32_1 = arith.constant 0 : i32
    return %c0_i32, %c0_i32_0 : i32, i32
  }
  func.func @transform_5(%arg0: i32) -> (i32, i32) {
    %c0_i32 = arith.constant 0 : i32
    %c0_i32_0 = arith.constant 0 : i32
    %c0_i32_1 = arith.constant 0 : i32
    return %c0_i32, %c0_i32_0 : i32, i32
  }
  func.func @transform_6(%arg0: i32) -> (i32, i32) {
    %c0_i32 = arith.constant 0 : i32
    %c0_i32_0 = arith.constant 0 : i32
    return %arg0, %c0_i32 : i32, i32
  }
}

module attributes {stable_mosaic.version = 11 : i64} {
  func.func @_timestep_embedder_kernel(%arg0: i32, %arg1: memref<8x1xf32, #tpu.memory_space<vmem>>, %arg2: memref<1x128xf32, #tpu.memory_space<vmem>>, %arg3: memref<256x128xbf16, #tpu.memory_space<vmem>>, %arg4: memref<1x128xbf16, #tpu.memory_space<vmem>>, %arg5: memref<128x128xbf16, #tpu.memory_space<vmem>>, %arg6: memref<1x128xbf16, #tpu.memory_space<vmem>>, %arg7: memref<8x128xbf16, #tpu.memory_space<vmem>>) attributes {dimension_semantics = [#tpu.dimension_semantics<parallel>], iteration_bounds = array<i64: 1>, scalar_prefetch = 0 : i64, scratch_operands = 0 : i64, tpu.core_type = #tpu.core_type<tc>, window_params = [{transform_indices = @transform_0, window_bounds = array<i64: 8, 1>}, {pipeline_mode = #tpu.pipeline_mode<synchronous>, transform_indices = @transform_1, window_bounds = array<i64: 1, 128>}, {pipeline_mode = #tpu.pipeline_mode<synchronous>, transform_indices = @transform_2, window_bounds = array<i64: 256, 128>}, {pipeline_mode = #tpu.pipeline_mode<synchronous>, transform_indices = @transform_3, window_bounds = array<i64: 1, 128>}, {pipeline_mode = #tpu.pipeline_mode<synchronous>, transform_indices = @transform_4, window_bounds = array<i64: 128, 128>}, {pipeline_mode = #tpu.pipeline_mode<synchronous>, transform_indices = @transform_5, window_bounds = array<i64: 1, 128>}, {transform_indices = @transform_6, window_bounds = array<i64: 8, 128>}]} {
    %c0 = arith.constant 0 : index
    %c0_0 = arith.constant 0 : index
    %0 = vector.load %arg1[%c0, %c0_0] : memref<8x1xf32, #tpu.memory_space<vmem>>, vector<8x1xf32>
    %c0_1 = arith.constant 0 : index
    %c0_2 = arith.constant 0 : index
    %1 = vector.load %arg2[%c0_1, %c0_2] : memref<1x128xf32, #tpu.memory_space<vmem>>, vector<1x128xf32>
    %2 = vector.broadcast %0 : vector<8x1xf32> to vector<8x128xf32>
    %3 = vector.broadcast %1 : vector<1x128xf32> to vector<8x128xf32>
    %4 = arith.mulf %2, %3 : vector<8x128xf32>
    %5 = math.cos %4 : vector<8x128xf32>
    %6 = arith.truncf %5 : vector<8x128xf32> to vector<8x128xbf16>
    %7 = math.sin %4 : vector<8x128xf32>
    %8 = arith.truncf %7 : vector<8x128xf32> to vector<8x128xbf16>
    %9 = tpu.concatenate %6, %8 in 1 : vector<8x128xbf16>, vector<8x128xbf16> -> vector<8x256xbf16>
    %c0_3 = arith.constant 0 : index
    %c0_4 = arith.constant 0 : index
    %10 = vector.load %arg3[%c0_3, %c0_4] : memref<256x128xbf16, #tpu.memory_space<vmem>>, vector<256x128xbf16>
    %cst = arith.constant dense<0.000000e+00> : vector<8x128xf32>
    %11 = tpu.matmul %9, %10, %cst {dimension_numbers = #tpu.dot_dimension_numbers<[1], [0], [0], [1], [0, 0, 1, 1], [], []>} : vector<8x256xbf16>, vector<256x128xbf16>, vector<8x128xf32> -> vector<8x128xf32>
    %c0_5 = arith.constant 0 : index
    %c0_6 = arith.constant 0 : index
    %12 = vector.load %arg4[%c0_5, %c0_6] : memref<1x128xbf16, #tpu.memory_space<vmem>>, vector<1x128xbf16>
    %13 = arith.extf %12 : vector<1x128xbf16> to vector<1x128xf32>
    %14 = vector.broadcast %13 : vector<1x128xf32> to vector<8x128xf32>
    %15 = arith.addf %11, %14 : vector<8x128xf32>
    %cst_7 = arith.constant 5.000000e-01 : f32
    %16 = vector.broadcast %cst_7 : f32 to vector<8x128xf32>
    %17 = arith.mulf %16, %15 : vector<8x128xf32>
    %18 = math.tanh %17 : vector<8x128xf32>
    %cst_8 = arith.constant 1.000000e+00 : f32
    %19 = vector.broadcast %cst_8 : f32 to vector<8x128xf32>
    %20 = arith.addf %19, %18 : vector<8x128xf32>
    %cst_9 = arith.constant 5.000000e-01 : f32
    %21 = vector.broadcast %cst_9 : f32 to vector<8x128xf32>
    %22 = arith.mulf %21, %20 : vector<8x128xf32>
    %23 = arith.mulf %15, %22 : vector<8x128xf32>
    %24 = arith.truncf %23 : vector<8x128xf32> to vector<8x128xbf16>
    %c0_10 = arith.constant 0 : index
    %c0_11 = arith.constant 0 : index
    %25 = vector.load %arg5[%c0_10, %c0_11] : memref<128x128xbf16, #tpu.memory_space<vmem>>, vector<128x128xbf16>
    %cst_12 = arith.constant dense<0.000000e+00> : vector<8x128xf32>
    %26 = tpu.matmul %24, %25, %cst_12 {dimension_numbers = #tpu.dot_dimension_numbers<[1], [0], [0], [1], [0, 0, 1, 1], [], []>} : vector<8x128xbf16>, vector<128x128xbf16>, vector<8x128xf32> -> vector<8x128xf32>
    %c0_13 = arith.constant 0 : index
    %c0_14 = arith.constant 0 : index
    %27 = vector.load %arg6[%c0_13, %c0_14] : memref<1x128xbf16, #tpu.memory_space<vmem>>, vector<1x128xbf16>
    %28 = arith.extf %27 : vector<1x128xbf16> to vector<1x128xf32>
    %29 = vector.broadcast %28 : vector<1x128xf32> to vector<8x128xf32>
    %30 = arith.addf %26, %29 : vector<8x128xf32>
    %31 = arith.truncf %30 : vector<8x128xf32> to vector<8x128xbf16>
    %c0_15 = arith.constant 0 : index
    %c0_16 = arith.constant 0 : index
    %32 = vector.load %arg7[%c0_15, %c0_16] : memref<8x128xbf16, #tpu.memory_space<vmem>>, vector<8x128xbf16>
    tpu.vector_store %arg7[%c0_15, %c0_16], %31 {strides = array<i32>} : memref<8x128xbf16, #tpu.memory_space<vmem>>, vector<8x128xbf16>,
    return
  }
  func.func @transform_0(%arg0: i32) -> (i32, i32) {
    %c0_i32 = arith.constant 0 : i32
    %c0_i32_0 = arith.constant 0 : i32
    return %arg0, %c0_i32 : i32, i32
  }
  func.func @transform_1(%arg0: i32) -> (i32, i32) {
    %c0_i32 = arith.constant 0 : i32
    %c0_i32_0 = arith.constant 0 : i32
    %c0_i32_1 = arith.constant 0 : i32
    return %c0_i32, %c0_i32_0 : i32, i32
  }
  func.func @transform_2(%arg0: i32) -> (i32, i32) {
    %c0_i32 = arith.constant 0 : i32
    %c0_i32_0 = arith.constant 0 : i32
    %c0_i32_1 = arith.constant 0 : i32
    return %c0_i32, %c0_i32_0 : i32, i32
  }
  func.func @transform_3(%arg0: i32) -> (i32, i32) {
    %c0_i32 = arith.constant 0 : i32
    %c0_i32_0 = arith.constant 0 : i32
    %c0_i32_1 = arith.constant 0 : i32
    return %c0_i32, %c0_i32_0 : i32, i32
  }
  func.func @transform_4(%arg0: i32) -> (i32, i32) {
    %c0_i32 = arith.constant 0 : i32
    %c0_i32_0 = arith.constant 0 : i32
    %c0_i32_1 = arith.constant 0 : i32
    return %c0_i32, %c0_i32_0 : i32, i32
  }
  func.func @transform_5(%arg0: i32) -> (i32, i32) {
    %c0_i32 = arith.constant 0 : i32
    %c0_i32_0 = arith.constant 0 : i32
    %c0_i32_1 = arith.constant 0 : i32
    return %c0_i32, %c0_i32_0 : i32, i32
  }
  func.func @transform_6(%arg0: i32) -> (i32, i32) {
    %c0_i32 = arith.constant 0 : i32
    %c0_i32_0 = arith.constant 0 : i32
    return %arg0, %c0_i32 : i32, i32
  }
}

</mosaic_0001>

<bundles_post_ra>
// kernel: tpu_custom_call.1
= control target key start
LH: loop header
LB: loop body
LE: loop exit
PB: predicated region body
PF: predicated region fallthrough
CT: control target
= control target key end

     0   :  { %11 = vsyncpa [#allocation3], 0  ;;  %s916_s0 = inlined_call_operand.vmem [shape: f32[8,1], index: 0, kind: input, shape index: {}]   ;;  %s917_s1 = inlined_call_operand.vmem [shape: f32[1,128], index: 1, kind: input, shape index: {}]   ;;  %s918_s2 = inlined_call_operand.hbm [shape: bf16[256,128], index: 2, kind: input, shape index: {}]   ;;  %s919_s3 = inlined_call_operand.vmem [shape: bf16[1,128], index: 3, kind: input, shape index: {}]   ;;  %s920_s4 = inlined_call_operand.hbm [shape: bf16[128,128], index: 4, kind: input, shape index: {}]   ;;  %s921_s5 = inlined_call_operand.vmem [shape: bf16[1,128], index: 5, kind: input, shape index: {}]   ;;  %s922_s6 = inlined_call_operand.hbm [shape: bf16[8,128], index: 6, kind: output, shape index: {}]  }
   0x1   :  { %12 = vsyncpa [#allocation6], 0 }
   0x2   :  { %13 = vsyncpa [#allocation4], 0  ;;  %s789_s21 = smov [#allocation2]   ;;  %s717_s25 = scalar_lea.hbm %s918_s2, 2048 }
   0x3   :  { %s23_s22 = sshll.u32 %s789_s21, 4  ;;  %p718_p0 = scmp.ne.s32.totalorder %s918_s2, %s717_s25  ;;  %s24_s22 = int_to_ptr.vmem [resolvable:$true] %s23_s22 }
   0x4   :  { %p721_p1 = scmp.lt.u32.totalorder %s717_s25, %s918_s2 }
   0x6   :  { %p723_p2 = pnand %p721_p1, %p718_p0 }
   0x8   :  { %726 = shalt.err (!%p723_p2)
}
   0x9   :  { %s727_s30 = scalar_lea.vmem %s24_s22, 2048  ;;  %p732_p4 = scmp.lt.s32.totalorder %s24_s22, %s24_s22 }
   0xa   :  { %p728_p3 = scmp.ne.s32.totalorder %s24_s22, %s727_s30  ;;  %p733_p5 = scmp.lt.s32.totalorder %s727_s30, %s727_s30 }
   0xc   :  { %p734_p6 = por %p733_p5, %p732_p4 }
   0xe   :  { %p735_p7 = pnand %p734_p6, %p728_p3 }
  0x10   :  { %738 = shalt.err (!%p735_p7)
}
  0x11   :  { %s790_s7 = smov 64   ;;  %s791_s8 = smov 4  }
  0x12   :  { %29 = dma.hbm_to_vmem [thread:$0]  %s918_s2, 2048, %s24_s22, [#allocation3], %s790_s7, %s790_s7, %s791_s8  }
  0x13   :  { %s792_s11 = smov [#allocation5]   ;;  %s739_s15 = scalar_lea.hbm %s920_s4, 1024 }
  0x14   :  { %s37_s12 = sshll.u32 %s792_s11, 4  ;;  %p740_p8 = scmp.ne.s32.totalorder %s920_s4, %s739_s15  ;;  %s38_s12 = int_to_ptr.vmem [resolvable:$true] %s37_s12 }
  0x15   :  { %p743_p9 = scmp.lt.u32.totalorder %s739_s15, %s920_s4 }
  0x17   :  { %p745_p10 = pnand %p743_p9, %p740_p8 }
  0x19   :  { %748 = shalt.err (!%p745_p10)
}
  0x1a   :  { %s749_s20 = scalar_lea.vmem %s38_s12, 1024  ;;  %p754_p12 = scmp.lt.s32.totalorder %s38_s12, %s38_s12 }
  0x1b   :  { %p750_p11 = scmp.ne.s32.totalorder %s38_s12, %s749_s20  ;;  %p755_p13 = scmp.lt.s32.totalorder %s749_s20, %s749_s20 }
  0x1d   :  { %p756_p0 = por %p755_p13, %p754_p12 }
  0x1f   :  { %p757_p1 = pnand %p756_p0, %p750_p11 }
  0x21   :  { %760 = shalt.err (!%p757_p1)
}
  0x22   :  { %43 = dma.hbm_to_vmem [thread:$0]  %s920_s4, 1024, %s38_s12, [#allocation6], %s790_s7, %s790_s7, %s791_s8  }
  0x23   :  { %783 = dma.done.wait [#allocation3], 2048  }
  0x24   :  { %784 = vsyncadd [#allocation3], 4294965248 }
  0x25   :  { %785 = dma.done.wait [#allocation6], 1024  }
  0x26   :  { %786 = vsyncadd [#allocation6], 4294966272  ;;  %v793_v0 = vmov 0   ;;  %v53_v1 = vld [vmem:[%s916_s0] sm:$0xff]  ;;  %v689_v4 = vld [vmem:[#allocation2 + $0x48] sm:$0xff]   ;;  %v794_v19 = vmov 0.0  }
  0x27   :  { %686 = vset.pattern.permute.xlu0 %v793_v0  ;;  %v687_v2 = vld [vmem:[#allocation2 + $0x40] sm:$0xff]   ;;  %v690_v5 = vld [vmem:[#allocation2 + $0x8] sm:$0xff]   ;;  %v691_v6 = vld [vmem:[#allocation2 + $0x50] sm:$0xff]   ;;  %648 = vmatprep.subr.bf16.mxu1 %v794_v19  ;;  %v795_v34 = vmov 2102212464  }
  0x28   :  { %57 = vperm.xlu0 %686, %v53_v1   ;;  %v688_v3 = vld [vmem:[#allocation2] sm:$0xff]   ;;  %617 = vmatprep.subr.bf16.mxu0 %v687_v2  ;;  %v692_v7 = vld [vmem:[#allocation2 + $0x10] sm:$0xff]   ;;  %v693_v8 = vld [vmem:[#allocation2 + $0x58] sm:$0xff]   ;;  %v796_v36 = vmov 920167782  }
  0x29   :  { %618 = vmatpush3.bf16.msra.mxu0 %v688_v3  ;;  %v694_v9 = vld [vmem:[#allocation2 + $0x18] sm:$0xff]   ;;  %v695_v10 = vld [vmem:[#allocation2 + $0x60] sm:$0xff]   ;;  %v697_v12 = vld [vmem:[#allocation2 + $0x68] sm:$0xff]   ;;  %v797_v40 = vmov 1326507024  }
  0x2a   :  { %619 = vmatprep.subr.bf16.mxu0 %v689_v4  ;;  %v696_v11 = vld [vmem:[#allocation2 + $0x20] sm:$0xff]   ;;  %v698_v13 = vld [vmem:[#allocation2 + $0x28] sm:$0xff]   ;;  %v699_v14 = vld [vmem:[#allocation2 + $0x70] sm:$0xff]   ;;  %v798_v42 = vmov 683565275  }
  0x2b   :  { %v700_v15 = vld [vmem:[#allocation2 + $0x30] sm:$0xff]   ;;  %v701_v16 = vld [vmem:[#allocation2 + $0x78] sm:$0xff]   ;;  %v703_v18 = vld [vmem:[#allocation5] sm:$0xff]   ;;  %v799_v44 = vmov 2475754826  }
  0x2c   :  { %v702_v17 = vld [vmem:[#allocation2 + $0x38] sm:$0xff]   ;;  %649 = vmatpush3.bf16.msra.mxu1 %v703_v18  ;;  %v584_v20 = vld [vmem:[%s917_s1] ss:$0 sm:$0xff]  ;;  %v800_v47 = vmov 2131351028  }
  0x2d   :  { %620 = vmatpush3.bf16.msra.mxu0 %v690_v5  ;;  %650 = vmatprep.subr.bf16.mxu1 %v794_v19 }
  0x2e   :  { %621 = vmatprep.subr.bf16.mxu0 %v691_v6 }
  0x31   :  { %622 = vmatpush3.bf16.msra.mxu0 %v692_v7 }
  0x32   :  { %623 = vmatprep.subr.bf16.mxu0 %v693_v8 }
  0x35   :  { %624 = vmatpush3.bf16.msra.mxu0 %v694_v9 }
  0x36   :  { %625 = vmatprep.subr.bf16.mxu0 %v695_v10 }
  0x39   :  { %626 = vmatpush3.bf16.msra.mxu0 %v696_v11 }
  0x3a   :  { %627 = vmatprep.subr.bf16.mxu0 %v697_v12 }
  0x3d   :  { %628 = vmatpush3.bf16.msra.mxu0 %v698_v13 }
  0x3e   :  { %629 = vmatprep.subr.bf16.mxu0 %v699_v14 }
  0x41   :  { %630 = vmatpush3.bf16.msra.mxu0 %v700_v15 }
  0x42   :  { %631 = vmatprep.subr.bf16.mxu0 %v701_v16 }
  0x45   :  { %632 = vmatpush3.bf16.msra.mxu0 %v702_v17 }
  0xa7   :  { %v58_v21 = vpop.permute.xlu0 %57 }
  0xa8   :  { %v870_v22 = vmul.f32 %v584_v20, %v58_v21 }
  0xaa   :  { %v70_v23 = vand.u32 2139095040, %v870_v22  ;;  %v67_v24 = vand.u32 2147483647, %v870_v22  ;;  %vm69_vm7 = vcmp.lt.s32.totalorder %v870_v22, 0  ;;  %vm159_vm15 = vweird.f32 %v870_v22 }
  0xac   :  { %v71_v25 = vshrl.u32 %v70_v23, 23  ;;  %v74_v27 = vand.u32 8388607, %v67_v24  ;;  %vm68_vm8 = vcmp.le.f32.partialorder %v67_v24, 0.7853982 }
  0xae   :  { %v585_v26 = vadd.s32 4294967169, %v71_v25  ;;  %v75_v30 = vor.u32 8388608, %v74_v27 }
  0xb0   :  { %v77_v28 = vadd.s32 1, %v585_v26  ;;  %v115_v38 = vshll.u32 %v75_v30, 8 }
  0xb2   :  { %vm78_vm0 = vcmp.gt.s32.totalorder %v77_v28, 0 }
  0xb3   :  { %v79_v29 = vsel %vm78_vm0, %v77_v28, 0  ;;  %vm801_vm0 = vmmov 0  }
  0xb4   :  { %v81_v31 = vand.u32 31, %v79_v29  ;;  %v80_v32 = vshrl.u32 %v79_v29, 5  ;;  %664 = vmatprep.mubr.msk.bf16.mxu1 %vm801_vm0, %v794_v19 }
  0xb6   :  { %v82_v33 = vsub.s32 32, %v81_v31  ;;  %v93_v35 = vshll.u32 %v795_v34, %v81_v31  ;;  %v96_v37 = vshll.u32 %v796_v36, %v81_v31  ;;  %v84_v43 = vshll.u32 %v798_v42, %v81_v31 }
  0xb7   :  { %v87_v46 = vshll.u32 %v799_v44, %v81_v31  ;;  %v90_v49 = vshll.u32 %v800_v47, %v81_v31  ;;  %vm102_vm1 = vcmp.lt.s32.totalorder %v80_v32, 4  ;;  %vm99_vm2 = vcmp.lt.s32.totalorder %v80_v32, 1 }
  0xb8   :  { %v94_v39 = vshrl.u32 %v796_v36, %v82_v33  ;;  %v97_v41 = vshrl.u32 %v797_v40, %v82_v33  ;;  %v85_v45 = vshrl.u32 %v799_v44, %v82_v33  ;;  %v88_v48 = vshrl.u32 %v800_v47, %v82_v33 }
  0xb9   :  { %v91_v50 = vshrl.u32 %v795_v34, %v82_v33  ;;  %v83_v54 = vshrl.u32 %v798_v42, %v82_v33  ;;  %vm100_vm3 = vcmp.lt.s32.totalorder %v80_v32, 2  ;;  %vm101_vm4 = vcmp.lt.s32.totalorder %v80_v32, 3 }
  0xba   :  { %v95_v51 = vor.u32 %v94_v39, %v93_v35  ;;  %v98_v52 = vor.u32 %v97_v41, %v96_v37  ;;  %v86_v53 = vor.u32 %v85_v45, %v84_v43  ;;  %v89_v55 = vor.u32 %v88_v48, %v87_v46 }
  0xbb   :  { %v92_v56 = vor.u32 %v91_v50, %v90_v49 }
  0xbc   :  { %v108_v57 = vsel %vm102_vm1, %v95_v51, 920167782  ;;  %v112_v58 = vsel %vm102_vm1, %v98_v52, 1326507024  ;;  %v107_v60 = vsel %vm99_vm2, %v86_v53, %v89_v55  ;;  %v103_v63 = vsel %vm99_vm2, %v83_v54, %v86_v53 }
  0xbd   :  { %v104_v59 = vsel %vm102_vm1, %v92_v56, 2102212464  ;;  %v109_v61 = vsel %vm101_vm4, %v92_v56, %v108_v57  ;;  %v111_v62 = vsel %vm99_vm2, %v89_v55, %v92_v56  ;;  %v113_v2 = vsel %vm101_vm4, %v95_v51, %v112_v58 }
  0xbe   :  { %v105_v0 = vsel %vm101_vm4, %v89_v55, %v104_v59  ;;  %v110_v1 = vsel %vm100_vm3, %v107_v60, %v109_v61  ;;  %v114_v3 = vsel %vm100_vm3, %v111_v62, %v113_v2  ;;  %v704_v59 = vld [vmem:[#allocation5 + $0x8] sm:$0xff]   ;;  %v705_v60 = vld [vmem:[#allocation5 + $0x10] sm:$0xff]   ;;  %v706_v61 = vld [vmem:[#allocation5 + $0x18] sm:$0xff]  }
  0xbf   :  { %v876_v4 = vmul.u32.u64.low %v115_v38, %v110_v1  ;;  %v877_v5 = vmul.u32.u64.high %v115_v38, %v110_v1, %v876_v4  ;;  %v879_v6 = vmul.u32.u64.low %v115_v38, %v114_v3  ;;  %v880_v7 = vmul.u32.u64.high %v115_v38, %v114_v3, %v879_v6  ;;  %651 = vmatpush3.bf16.msra.mxu1 %v704_v59  ;;  %v708_v62 = vld [vmem:[#allocation5 + $0x28] sm:$0xff]   ;;  %v308_v3 = vld [vmem:[%s919_s3] sm:$0x1]  ;;  %s802_s3 = smov [#allocation7]  }
  0xc0   :  { %v106_v8 = vsel %vm100_vm3, %v103_v63, %v105_v0  ;;  %652 = vmatprep.subr.bf16.mxu1 %v794_v19  ;;  %v709_v63 = vld [vmem:[#allocation5 + $0x30] sm:$0xff]   ;;  %v710_v0 = vld [vmem:[#allocation5 + $0x38] sm:$0xff]   ;;  %v310_v1 = vlaneseq  ;;  %s574_s27 = sshll.u32 %s802_s3, 4  ;;  %s575_s27 = int_to_ptr.vmem [resolvable:$true] %s574_s27 }
  0xc1   :  { %v125_v9 = vadd.s32 1, %v877_v5  ;;  %v122_v10 = vmul.u32 %v115_v38, %v106_v8  ;;  %vm124_vm5 = vc.u32 %v880_v7, %v876_v4  ;;  %v123_v25 = vadd.s32 %v876_v4, %v880_v7  ;;  %s761_s28 = scalar_lea.vmem %s575_s27, 64  ;;  %p766_p3 = scmp.lt.s32.totalorder %s575_s27, %s575_s27 }
  0xc2   :  { %v311_v2 = vshrl.u32 %v310_v1, 7  ;;  %v309_v4 = vunpack.c.l.bf16 %v308_v3  ;;  %p762_p2 = scmp.ne.s32.totalorder %s575_s27, %s761_s28  ;;  %p767_p4 = scmp.lt.s32.totalorder %s761_s28, %s761_s28 }
  0xc3   :  { %v126_v11 = vsel %vm124_vm5, %v125_v9, %v877_v5  ;;  %653 = vmatpush3.bf16.msra.mxu1 %v705_v60 }
  0xc4   :  { %v127_v12 = vadd.s32 %v126_v11, %v122_v10  ;;  %654 = vmatprep.subr.bf16.mxu1 %v794_v19  ;;  %v312_v5 = vsub.s32 0, %v311_v2  ;;  %p768_p5 = por %p767_p4, %p766_p3 }
  0xc6   :  { %v128_v13 = vadd.s32 536870912, %v127_v12  ;;  %v313_v7 = vrot.slane %v309_v4, %v312_v5  ;;  %p769_p6 = pnand %p768_p5, %p762_p2 }
  0xc7   :  { %655 = vmatpush3.bf16.msra.mxu1 %v706_v61 }
  0xc8   :  { %v129_v14 = vshrl.u32 %v128_v13, 30  ;;  %656 = vmatprep.subr.bf16.mxu1 %v794_v19 }
  0xca   :  { %v130_v15 = vshll.u32 %v129_v14, 30  ;;  %v153_v37 = vsub.s32 4, %v129_v14 }
  0xcc   :  { %v131_v16 = vsub.s32 %v127_v12, %v130_v15  ;;  %v154_v40 = vsel %vm69_vm7, %v153_v37, %v129_v14 }
  0xcd   :  { %v156_v42 = vsel %vm68_vm8, 0, %v154_v40 }
  0xce   :  { %v133_v17 = vsub.s32 0, %v131_v16  ;;  %v264_v43 = vadd.s32 3, %v156_v42  ;;  %v160_v44 = vand.u32 3, %v156_v42 }
  0xd0   :  { %v586_v18 = vmin.u32 %v133_v17, %v131_v16  ;;  %v265_v45 = vand.u32 3, %v264_v43  ;;  %vm165_vm9 = vcmp.eq.s32.totalorder %v160_v44, 2  ;;  %vm162_vm11 = vcmp.eq.s32.totalorder %v160_v44, 0 }
  0xd1   :  { %vm161_vm13 = vcmp.lt.s32.totalorder %v160_v44, 2 }
  0xd2   :  { %v135_v20 = vclz %v586_v18  ;;  %vm270_vm10 = vcmp.eq.s32.totalorder %v265_v45, 2  ;;  %vm267_vm12 = vcmp.eq.s32.totalorder %v265_v45, 0  ;;  %vm266_vm14 = vcmp.lt.s32.totalorder %v265_v45, 2  ;;  %v472_v18 = vld [vmem:[%s921_s5] sm:$0x1] }
  0xd4   :  { %v587_v21 = vadd.s32 4294967294, %v135_v20  ;;  %v473_v20 = vunpack.c.l.bf16 %v472_v18 }
  0xd6   :  { %vm588_vm6 = vcmp.lt.s32.totalorder %v587_v21, 0 }
  0xd7   :  { %v138_v23 = vsel %vm588_vm6, 0, %v587_v21  ;;  %v477_v21 = vrot.slane %v473_v20, %v312_v5 }
  0xd8   :  { %v139_v26 = vsub.s32 32, %v138_v23  ;;  %v143_v27 = vsub.s32 4294967266, %v138_v23  ;;  %v140_v28 = vshll.u32 %v131_v16, %v138_v23 }
  0xda   :  { %v141_v29 = vshrl.u32 %v123_v25, %v139_v26  ;;  %v144_v30 = vadd.s32 127, %v143_v27 }
  0xdc   :  { %v142_v31 = vor.u32 %v141_v29, %v140_v28  ;;  %v145_v32 = vshll.u32 %v144_v30, 23 }
  0xde   :  { %v146_v33 = vor.u32 4788187, %v145_v32  ;;  %v149_v35 = vcvt.s32.f32 %v142_v31 }
  0xe0   :  { %v147_v34 = vand.u32 2147483647, %v146_v33 }
  0xe2   :  { %v150_v36 = vmul.f32 %v149_v35, %v147_v34 }
  0xe4   :  { %v151_v38 = vxor.u32 2147483648, %v150_v36 }
  0xe6   :  { %v152_v39 = vsel %vm69_vm7, %v151_v38, %v150_v36 }
  0xe7   :  { %v155_v41 = vsel %vm68_vm8, %v870_v22, %v152_v39  ;;  %v707_v22 = vld [vmem:[#allocation5 + $0x20] sm:$0xff]  }
  0xe8   :  { %711 = vcosq.f32 %v155_v41  ;;  %657 = vmatpush3.bf16.msra.mxu1 %v707_v22 }
  0xe9   :  { %713 = vsinq.f32 %v155_v41  ;;  %658 = vmatprep.subr.bf16.mxu1 %v794_v19 }
  0xec   :  { %659 = vmatpush3.bf16.msra.mxu1 %v708_v62 }
  0xed   :  { %660 = vmatprep.subr.bf16.mxu1 %v794_v19 }
  0xf0   :  { %661 = vmatpush3.bf16.msra.mxu1 %v709_v63 }
  0xf1   :  { %662 = vmatprep.subr.bf16.mxu1 %v794_v19 }
  0xf2   :  { %v712_v46 = vpop.eup %711 }
  0xf3   :  { %v714_v47 = vpop.eup %713  ;;  %v166_v48 = vxor.u32 2147483648, %v712_v46 }
  0xf4   :  { %v163_v49 = vxor.u32 2147483648, %v714_v47  ;;  %663 = vmatpush3.bf16.msra.mxu1 %v710_v0 }
  0xf5   :  { %v167_v50 = vsel %vm165_vm9, %v166_v48, %v714_v47  ;;  %v272_v24 = vsel %vm270_vm10, %v166_v48, %v714_v47 }
  0xf6   :  { %v164_v51 = vsel %vm162_vm11, %v712_v46, %v163_v49  ;;  %v269_v52 = vsel %vm267_vm12, %v712_v46, %v163_v49 }
  0xf7   :  { %v168_v53 = vsel %vm161_vm13, %v164_v51, %v167_v50  ;;  %v273_v54 = vsel %vm266_vm14, %v269_v52, %v272_v24 }
  0xf8   :  { %v169_v55 = vsel %vm159_vm15, nan, %v168_v53  ;;  %v274_v56 = vsel %vm159_vm15, nan, %v273_v54 }
  0xf9   :  { %v170_v57 = vpack.c.bf16 %v169_v55, %v169_v55  ;;  %v275_v58 = vpack.c.bf16 %v274_v56, %v274_v56 }
  0xfb   :  { %442 = vmatprep.mubr.bf16.mxu0 %v275_v58 }
  0xfc   :  { %443 = vmatmul.mubr.bf16.vlgmr.msra.gmra.mrb[0].mxu0 %v170_v57 }
 0x1cf   :  { %v633_v6 = vpop.f32.mrb[0].mxu0 }
 0x1d0   :  { %v634_v8 = vpop.f32.mrb[1].mxu0 }
 0x1d1   :  { %v635_v9 = vadd.f32 %v634_v8, %v633_v6  ;;  %v636_v10 = vpop.f32.mrb[2].mxu0 }
 0x1d2   :  { %v637_v11 = vpop.f32.mrb[3].mxu0 }
 0x1d3   :  { %v445_v12 = vadd.f32 %v635_v9, %v313_v7 }
 0x1d5   :  { %v450_v13 = vmul.f32 0.5, %v445_v12 }
 0x1d7   :  { %715 = vtanh.f32 %v450_v13 }
 0x1e1   :  { %v716_v14 = vpop.eup %715 }
 0x1e2   :  { %v452_v19 = vadd.f32 1.0, %v716_v14 }
 0x1e4   :  { %v453_v15 = vmul.f32 0.5, %v452_v19 }
 0x1e6   :  { %v454_v16 = vmul.f32 %v453_v15, %v445_v12 }
 0x1e8   :  { %v455_v17 = vpack.c.bf16 %v454_v16, %v454_v16 }
 0x1ea   :  { %665 = vmatmul.mubr.bf16.vlgmr.msra.gmra.mrb[0].mxu1 %v455_v17 }
 0x2bd   :  { %v560_v23 = vpop.f32.mrb[0].mxu1 }
 0x2be   :  { %v561_v25 = vadd.f32 %v560_v23, %v477_v21  ;;  %v666_v26 = vpop.f32.mrb[1].mxu1 }
 0x2bf   :  { %v563_v27 = vpop.f32.mrb[2].mxu1 }
 0x2c0   :  { %v566_v28 = vpack.c.bf16 %v561_v25, %v561_v25  ;;  %v667_v29 = vpop.f32.mrb[3].mxu1 }
 0x2c2   :  { %567 = vst [vmem:[#allocation7] sm:$0xf] %v566_v28 }
 0x2c3   :  { %772 = shalt.err (!%p769_p6)
}
 0x2c4   :  { %s773_s30 = scalar_lea.hbm %s922_s6, 64 }
 0x2c5   :  { %p774_p7 = scmp.ne.s32.totalorder %s922_s6, %s773_s30  ;;  %p777_p8 = scmp.lt.u32.totalorder %s773_s30, %s922_s6 }
 0x2c7   :  { %p779_p9 = pnand %p777_p8, %p774_p7 }
 0x2c9   :  { %782 = shalt.err (!%p779_p9)
}
 0x2ca   :  { %577 = dma.vmem_to_hbm [thread:$0]  %s575_s27, 64, %s922_s6, [#allocation4]  }
 0x2cb   :  { %787 = dma.done.wait [#allocation4], 64  }
 0x2cc   :  { %788 = vsyncadd [#allocation4], 4294967232 }
 0x2cd   :  { %581 = vsyncpa [#allocation3], 1 }
 0x2ce   :  { %582 = vsyncpa [#allocation6], 1 }
 0x2cf   :  { %583 = vsyncpa [#allocation4], 1 }

// kernel: tpu_custom_call.1
= control target key start
LH: loop header
LB: loop body
LE: loop exit
PB: predicated region body
PF: predicated region fallthrough
CT: control target
= control target key end

     0   :  { %11 = vsyncpa [#allocation3], 0  ;;  %s916_s0 = inlined_call_operand.vmem [shape: f32[8,1], index: 0, kind: input, shape index: {}]   ;;  %s917_s1 = inlined_call_operand.vmem [shape: f32[1,128], index: 1, kind: input, shape index: {}]   ;;  %s918_s2 = inlined_call_operand.hbm [shape: bf16[256,128], index: 2, kind: input, shape index: {}]   ;;  %s919_s3 = inlined_call_operand.vmem [shape: bf16[1,128], index: 3, kind: input, shape index: {}]   ;;  %s920_s4 = inlined_call_operand.hbm [shape: bf16[128,128], index: 4, kind: input, shape index: {}]   ;;  %s921_s5 = inlined_call_operand.vmem [shape: bf16[1,128], index: 5, kind: input, shape index: {}]   ;;  %s922_s6 = inlined_call_operand.hbm [shape: bf16[8,128], index: 6, kind: output, shape index: {}]  }
   0x1   :  { %12 = vsyncpa [#allocation6], 0 }
   0x2   :  { %13 = vsyncpa [#allocation4], 0  ;;  %s789_s21 = smov [#allocation2]   ;;  %s717_s25 = scalar_lea.hbm %s918_s2, 2048 }
   0x3   :  { %s23_s22 = sshll.u32 %s789_s21, 4  ;;  %p718_p0 = scmp.ne.s32.totalorder %s918_s2, %s717_s25  ;;  %s24_s22 = int_to_ptr.vmem [resolvable:$true] %s23_s22 }
   0x4   :  { %p721_p1 = scmp.lt.u32.totalorder %s717_s25, %s918_s2 }
   0x6   :  { %p723_p2 = pnand %p721_p1, %p718_p0 }
   0x8   :  { %726 = shalt.err (!%p723_p2)
}
   0x9   :  { %s727_s30 = scalar_lea.vmem %s24_s22, 2048  ;;  %p732_p4 = scmp.lt.s32.totalorder %s24_s22, %s24_s22 }
   0xa   :  { %p728_p3 = scmp.ne.s32.totalorder %s24_s22, %s727_s30  ;;  %p733_p5 = scmp.lt.s32.totalorder %s727_s30, %s727_s30 }
   0xc   :  { %p734_p6 = por %p733_p5, %p732_p4 }
   0xe   :  { %p735_p7 = pnand %p734_p6, %p728_p3 }
  0x10   :  { %738 = shalt.err (!%p735_p7)
}
  0x11   :  { %s790_s7 = smov 64   ;;  %s791_s8 = smov 4  }
  0x12   :  { %29 = dma.hbm_to_vmem [thread:$0]  %s918_s2, 2048, %s24_s22, [#allocation3], %s790_s7, %s790_s7, %s791_s8  }
  0x13   :  { %s792_s11 = smov [#allocation5]   ;;  %s739_s15 = scalar_lea.hbm %s920_s4, 1024 }
  0x14   :  { %s37_s12 = sshll.u32 %s792_s11, 4  ;;  %p740_p8 = scmp.ne.s32.totalorder %s920_s4, %s739_s15  ;;  %s38_s12 = int_to_ptr.vmem [resolvable:$true] %s37_s12 }
  0x15   :  { %p743_p9 = scmp.lt.u32.totalorder %s739_s15, %s920_s4 }
  0x17   :  { %p745_p10 = pnand %p743_p9, %p740_p8 }
  0x19   :  { %748 = shalt.err (!%p745_p10)
}
  0x1a   :  { %s749_s20 = scalar_lea.vmem %s38_s12, 1024  ;;  %p754_p12 = scmp.lt.s32.totalorder %s38_s12, %s38_s12 }
  0x1b   :  { %p750_p11 = scmp.ne.s32.totalorder %s38_s12, %s749_s20  ;;  %p755_p13 = scmp.lt.s32.totalorder %s749_s20, %s749_s20 }
  0x1d   :  { %p756_p0 = por %p755_p13, %p754_p12 }
  0x1f   :  { %p757_p1 = pnand %p756_p0, %p750_p11 }
  0x21   :  { %760 = shalt.err (!%p757_p1)
}
  0x22   :  { %43 = dma.hbm_to_vmem [thread:$0]  %s920_s4, 1024, %s38_s12, [#allocation6], %s790_s7, %s790_s7, %s791_s8  }
  0x23   :  { %783 = dma.done.wait [#allocation3], 2048  }
  0x24   :  { %784 = vsyncadd [#allocation3], 4294965248 }
  0x25   :  { %785 = dma.done.wait [#allocation6], 1024  }
  0x26   :  { %786 = vsyncadd [#allocation6], 4294966272  ;;  %v793_v0 = vmov 0   ;;  %v53_v1 = vld [vmem:[%s916_s0] sm:$0xff]  ;;  %v689_v4 = vld [vmem:[#allocation2 + $0x48] sm:$0xff]   ;;  %v794_v19 = vmov 0.0  }
  0x27   :  { %686 = vset.pattern.permute.xlu0 %v793_v0  ;;  %v687_v2 = vld [vmem:[#allocation2 + $0x40] sm:$0xff]   ;;  %v690_v5 = vld [vmem:[#allocation2 + $0x8] sm:$0xff]   ;;  %v691_v6 = vld [vmem:[#allocation2 + $0x50] sm:$0xff]   ;;  %648 = vmatprep.subr.bf16.mxu1 %v794_v19  ;;  %v795_v34 = vmov 2102212464  }
  0x28   :  { %57 = vperm.xlu0 %686, %v53_v1   ;;  %v688_v3 = vld [vmem:[#allocation2] sm:$0xff]   ;;  %617 = vmatprep.subr.bf16.mxu0 %v687_v2  ;;  %v692_v7 = vld [vmem:[#allocation2 + $0x10] sm:$0xff]   ;;  %v693_v8 = vld [vmem:[#allocation2 + $0x58] sm:$0xff]   ;;  %v796_v36 = vmov 920167782  }
  0x29   :  { %618 = vmatpush3.bf16.msra.mxu0 %v688_v3  ;;  %v694_v9 = vld [vmem:[#allocation2 + $0x18] sm:$0xff]   ;;  %v695_v10 = vld [vmem:[#allocation2 + $0x60] sm:$0xff]   ;;  %v697_v12 = vld [vmem:[#allocation2 + $0x68] sm:$0xff]   ;;  %v797_v40 = vmov 1326507024  }
  0x2a   :  { %619 = vmatprep.subr.bf16.mxu0 %v689_v4  ;;  %v696_v11 = vld [vmem:[#allocation2 + $0x20] sm:$0xff]   ;;  %v698_v13 = vld [vmem:[#allocation2 + $0x28] sm:$0xff]   ;;  %v699_v14 = vld [vmem:[#allocation2 + $0x70] sm:$0xff]   ;;  %v798_v42 = vmov 683565275  }
  0x2b   :  { %v700_v15 = vld [vmem:[#allocation2 + $0x30] sm:$0xff]   ;;  %v701_v16 = vld [vmem:[#allocation2 + $0x78] sm:$0xff]   ;;  %v703_v18 = vld [vmem:[#allocation5] sm:$0xff]   ;;  %v799_v44 = vmov 2475754826  }
  0x2c   :  { %v702_v17 = vld [vmem:[#allocation2 + $0x38] sm:$0xff]   ;;  %649 = vmatpush3.bf16.msra.mxu1 %v703_v18  ;;  %v584_v20 = vld [vmem:[%s917_s1] ss:$0 sm:$0xff]  ;;  %v800_v47 = vmov 2131351028  }
  0x2d   :  { %620 = vmatpush3.bf16.msra.mxu0 %v690_v5  ;;  %650 = vmatprep.subr.bf16.mxu1 %v794_v19 }
  0x2e   :  { %621 = vmatprep.subr.bf16.mxu0 %v691_v6 }
  0x31   :  { %622 = vmatpush3.bf16.msra.mxu0 %v692_v7 }
  0x32   :  { %623 = vmatprep.subr.bf16.mxu0 %v693_v8 }
  0x35   :  { %624 = vmatpush3.bf16.msra.mxu0 %v694_v9 }
  0x36   :  { %625 = vmatprep.subr.bf16.mxu0 %v695_v10 }
  0x39   :  { %626 = vmatpush3.bf16.msra.mxu0 %v696_v11 }
  0x3a   :  { %627 = vmatprep.subr.bf16.mxu0 %v697_v12 }
  0x3d   :  { %628 = vmatpush3.bf16.msra.mxu0 %v698_v13 }
  0x3e   :  { %629 = vmatprep.subr.bf16.mxu0 %v699_v14 }
  0x41   :  { %630 = vmatpush3.bf16.msra.mxu0 %v700_v15 }
  0x42   :  { %631 = vmatprep.subr.bf16.mxu0 %v701_v16 }
  0x45   :  { %632 = vmatpush3.bf16.msra.mxu0 %v702_v17 }
  0xa7   :  { %v58_v21 = vpop.permute.xlu0 %57 }
  0xa8   :  { %v870_v22 = vmul.f32 %v584_v20, %v58_v21 }
  0xaa   :  { %v70_v23 = vand.u32 2139095040, %v870_v22  ;;  %v67_v24 = vand.u32 2147483647, %v870_v22  ;;  %vm69_vm7 = vcmp.lt.s32.totalorder %v870_v22, 0  ;;  %vm159_vm15 = vweird.f32 %v870_v22 }
  0xac   :  { %v71_v25 = vshrl.u32 %v70_v23, 23  ;;  %v74_v27 = vand.u32 8388607, %v67_v24  ;;  %vm68_vm8 = vcmp.le.f32.partialorder %v67_v24, 0.7853982 }
  0xae   :  { %v585_v26 = vadd.s32 4294967169, %v71_v25  ;;  %v75_v30 = vor.u32 8388608, %v74_v27 }
  0xb0   :  { %v77_v28 = vadd.s32 1, %v585_v26  ;;  %v115_v38 = vshll.u32 %v75_v30, 8 }
  0xb2   :  { %vm78_vm0 = vcmp.gt.s32.totalorder %v77_v28, 0 }
  0xb3   :  { %v79_v29 = vsel %vm78_vm0, %v77_v28, 0  ;;  %vm801_vm0 = vmmov 0  }
  0xb4   :  { %v81_v31 = vand.u32 31, %v79_v29  ;;  %v80_v32 = vshrl.u32 %v79_v29, 5  ;;  %664 = vmatprep.mubr.msk.bf16.mxu1 %vm801_vm0, %v794_v19 }
  0xb6   :  { %v82_v33 = vsub.s32 32, %v81_v31  ;;  %v93_v35 = vshll.u32 %v795_v34, %v81_v31  ;;  %v96_v37 = vshll.u32 %v796_v36, %v81_v31  ;;  %v84_v43 = vshll.u32 %v798_v42, %v81_v31 }
  0xb7   :  { %v87_v46 = vshll.u32 %v799_v44, %v81_v31  ;;  %v90_v49 = vshll.u32 %v800_v47, %v81_v31  ;;  %vm102_vm1 = vcmp.lt.s32.totalorder %v80_v32, 4  ;;  %vm99_vm2 = vcmp.lt.s32.totalorder %v80_v32, 1 }
  0xb8   :  { %v94_v39 = vshrl.u32 %v796_v36, %v82_v33  ;;  %v97_v41 = vshrl.u32 %v797_v40, %v82_v33  ;;  %v85_v45 = vshrl.u32 %v799_v44, %v82_v33  ;;  %v88_v48 = vshrl.u32 %v800_v47, %v82_v33 }
  0xb9   :  { %v91_v50 = vshrl.u32 %v795_v34, %v82_v33  ;;  %v83_v54 = vshrl.u32 %v798_v42, %v82_v33  ;;  %vm100_vm3 = vcmp.lt.s32.totalorder %v80_v32, 2  ;;  %vm101_vm4 = vcmp.lt.s32.totalorder %v80_v32, 3 }
  0xba   :  { %v95_v51 = vor.u32 %v94_v39, %v93_v35  ;;  %v98_v52 = vor.u32 %v97_v41, %v96_v37  ;;  %v86_v53 = vor.u32 %v85_v45, %v84_v43  ;;  %v89_v55 = vor.u32 %v88_v48, %v87_v46 }
  0xbb   :  { %v92_v56 = vor.u32 %v91_v50, %v90_v49 }
  0xbc   :  { %v108_v57 = vsel %vm102_vm1, %v95_v51, 920167782  ;;  %v112_v58 = vsel %vm102_vm1, %v98_v52, 1326507024  ;;  %v107_v60 = vsel %vm99_vm2, %v86_v53, %v89_v55  ;;  %v103_v63 = vsel %vm99_vm2, %v83_v54, %v86_v53 }
  0xbd   :  { %v104_v59 = vsel %vm102_vm1, %v92_v56, 2102212464  ;;  %v109_v61 = vsel %vm101_vm4, %v92_v56, %v108_v57  ;;  %v111_v62 = vsel %vm99_vm2, %v89_v55, %v92_v56  ;;  %v113_v2 = vsel %vm101_vm4, %v95_v51, %v112_v58 }
  0xbe   :  { %v105_v0 = vsel %vm101_vm4, %v89_v55, %v104_v59  ;;  %v110_v1 = vsel %vm100_vm3, %v107_v60, %v109_v61  ;;  %v114_v3 = vsel %vm100_vm3, %v111_v62, %v113_v2  ;;  %v704_v59 = vld [vmem:[#allocation5 + $0x8] sm:$0xff]   ;;  %v705_v60 = vld [vmem:[#allocation5 + $0x10] sm:$0xff]   ;;  %v706_v61 = vld [vmem:[#allocation5 + $0x18] sm:$0xff]  }
  0xbf   :  { %v876_v4 = vmul.u32.u64.low %v115_v38, %v110_v1  ;;  %v877_v5 = vmul.u32.u64.high %v115_v38, %v110_v1, %v876_v4  ;;  %v879_v6 = vmul.u32.u64.low %v115_v38, %v114_v3  ;;  %v880_v7 = vmul.u32.u64.high %v115_v38, %v114_v3, %v879_v6  ;;  %651 = vmatpush3.bf16.msra.mxu1 %v704_v59  ;;  %v708_v62 = vld [vmem:[#allocation5 + $0x28] sm:$0xff]   ;;  %v308_v3 = vld [vmem:[%s919_s3] sm:$0x1]  ;;  %s802_s3 = smov [#allocation7]  }
  0xc0   :  { %v106_v8 = vsel %vm100_vm3, %v103_v63, %v105_v0  ;;  %652 = vmatprep.subr.bf16.mxu1 %v794_v19  ;;  %v709_v63 = vld [vmem:[#allocation5 + $0x30] sm:$0xff]   ;;  %v710_v0 = vld [vmem:[#allocation5 + $0x38] sm:$0xff]   ;;  %v310_v1 = vlaneseq  ;;  %s574_s27 = sshll.u32 %s802_s3, 4  ;;  %s575_s27 = int_to_ptr.vmem [resolvable:$true] %s574_s27 }
  0xc1   :  { %v125_v9 = vadd.s32 1, %v877_v5  ;;  %v122_v10 = vmul.u32 %v115_v38, %v106_v8  ;;  %vm124_vm5 = vc.u32 %v880_v7, %v876_v4  ;;  %v123_v25 = vadd.s32 %v876_v4, %v880_v7  ;;  %s761_s28 = scalar_lea.vmem %s575_s27, 64  ;;  %p766_p3 = scmp.lt.s32.totalorder %s575_s27, %s575_s27 }
  0xc2   :  { %v311_v2 = vshrl.u32 %v310_v1, 7  ;;  %v309_v4 = vunpack.c.l.bf16 %v308_v3  ;;  %p762_p2 = scmp.ne.s32.totalorder %s575_s27, %s761_s28  ;;  %p767_p4 = scmp.lt.s32.totalorder %s761_s28, %s761_s28 }
  0xc3   :  { %v126_v11 = vsel %vm124_vm5, %v125_v9, %v877_v5  ;;  %653 = vmatpush3.bf16.msra.mxu1 %v705_v60 }
  0xc4   :  { %v127_v12 = vadd.s32 %v126_v11, %v122_v10  ;;  %654 = vmatprep.subr.bf16.mxu1 %v794_v19  ;;  %v312_v5 = vsub.s32 0, %v311_v2  ;;  %p768_p5 = por %p767_p4, %p766_p3 }
  0xc6   :  { %v128_v13 = vadd.s32 536870912, %v127_v12  ;;  %v313_v7 = vrot.slane %v309_v4, %v312_v5  ;;  %p769_p6 = pnand %p768_p5, %p762_p2 }
  0xc7   :  { %655 = vmatpush3.bf16.msra.mxu1 %v706_v61 }
  0xc8   :  { %v129_v14 = vshrl.u32 %v128_v13, 30  ;;  %656 = vmatprep.subr.bf16.mxu1 %v794_v19 }
  0xca   :  { %v130_v15 = vshll.u32 %v129_v14, 30  ;;  %v153_v37 = vsub.s32 4, %v129_v14 }
  0xcc   :  { %v131_v16 = vsub.s32 %v127_v12, %v130_v15  ;;  %v154_v40 = vsel %vm69_vm7, %v153_v37, %v129_v14 }
  0xcd   :  { %v156_v42 = vsel %vm68_vm8, 0, %v154_v40 }
  0xce   :  { %v133_v17 = vsub.s32 0, %v131_v16  ;;  %v264_v43 = vadd.s32 3, %v156_v42  ;;  %v160_v44 = vand.u32 3, %v156_v42 }
  0xd0   :  { %v586_v18 = vmin.u32 %v133_v17, %v131_v16  ;;  %v265_v45 = vand.u32 3, %v264_v43  ;;  %vm165_vm9 = vcmp.eq.s32.totalorder %v160_v44, 2  ;;  %vm162_vm11 = vcmp.eq.s32.totalorder %v160_v44, 0 }
  0xd1   :  { %vm161_vm13 = vcmp.lt.s32.totalorder %v160_v44, 2 }
  0xd2   :  { %v135_v20 = vclz %v586_v18  ;;  %vm270_vm10 = vcmp.eq.s32.totalorder %v265_v45, 2  ;;  %vm267_vm12 = vcmp.eq.s32.totalorder %v265_v45, 0  ;;  %vm266_vm14 = vcmp.lt.s32.totalorder %v265_v45, 2  ;;  %v472_v18 = vld [vmem:[%s921_s5] sm:$0x1] }
  0xd4   :  { %v587_v21 = vadd.s32 4294967294, %v135_v20  ;;  %v473_v20 = vunpack.c.l.bf16 %v472_v18 }
  0xd6   :  { %vm588_vm6 = vcmp.lt.s32.totalorder %v587_v21, 0 }
  0xd7   :  { %v138_v23 = vsel %vm588_vm6, 0, %v587_v21  ;;  %v477_v21 = vrot.slane %v473_v20, %v312_v5 }
  0xd8   :  { %v139_v26 = vsub.s32 32, %v138_v23  ;;  %v143_v27 = vsub.s32 4294967266, %v138_v23  ;;  %v140_v28 = vshll.u32 %v131_v16, %v138_v23 }
  0xda   :  { %v141_v29 = vshrl.u32 %v123_v25, %v139_v26  ;;  %v144_v30 = vadd.s32 127, %v143_v27 }
  0xdc   :  { %v142_v31 = vor.u32 %v141_v29, %v140_v28  ;;  %v145_v32 = vshll.u32 %v144_v30, 23 }
  0xde   :  { %v146_v33 = vor.u32 4788187, %v145_v32  ;;  %v149_v35 = vcvt.s32.f32 %v142_v31 }
  0xe0   :  { %v147_v34 = vand.u32 2147483647, %v146_v33 }
  0xe2   :  { %v150_v36 = vmul.f32 %v149_v35, %v147_v34 }
  0xe4   :  { %v151_v38 = vxor.u32 2147483648, %v150_v36 }
  0xe6   :  { %v152_v39 = vsel %vm69_vm7, %v151_v38, %v150_v36 }
  0xe7   :  { %v155_v41 = vsel %vm68_vm8, %v870_v22, %v152_v39  ;;  %v707_v22 = vld [vmem:[#allocation5 + $0x20] sm:$0xff]  }
  0xe8   :  { %711 = vcosq.f32 %v155_v41  ;;  %657 = vmatpush3.bf16.msra.mxu1 %v707_v22 }
  0xe9   :  { %713 = vsinq.f32 %v155_v41  ;;  %658 = vmatprep.subr.bf16.mxu1 %v794_v19 }
  0xec   :  { %659 = vmatpush3.bf16.msra.mxu1 %v708_v62 }
  0xed   :  { %660 = vmatprep.subr.bf16.mxu1 %v794_v19 }
  0xf0   :  { %661 = vmatpush3.bf16.msra.mxu1 %v709_v63 }
  0xf1   :  { %662 = vmatprep.subr.bf16.mxu1 %v794_v19 }
  0xf2   :  { %v712_v46 = vpop.eup %711 }
  0xf3   :  { %v714_v47 = vpop.eup %713  ;;  %v166_v48 = vxor.u32 2147483648, %v712_v46 }
  0xf4   :  { %v163_v49 = vxor.u32 2147483648, %v714_v47  ;;  %663 = vmatpush3.bf16.msra.mxu1 %v710_v0 }
  0xf5   :  { %v167_v50 = vsel %vm165_vm9, %v166_v48, %v714_v47  ;;  %v272_v24 = vsel %vm270_vm10, %v166_v48, %v714_v47 }
  0xf6   :  { %v164_v51 = vsel %vm162_vm11, %v712_v46, %v163_v49  ;;  %v269_v52 = vsel %vm267_vm12, %v712_v46, %v163_v49 }
  0xf7   :  { %v168_v53 = vsel %vm161_vm13, %v164_v51, %v167_v50  ;;  %v273_v54 = vsel %vm266_vm14, %v269_v52, %v272_v24 }
  0xf8   :  { %v169_v55 = vsel %vm159_vm15, nan, %v168_v53  ;;  %v274_v56 = vsel %vm159_vm15, nan, %v273_v54 }
  0xf9   :  { %v170_v57 = vpack.c.bf16 %v169_v55, %v169_v55  ;;  %v275_v58 = vpack.c.bf16 %v274_v56, %v274_v56 }
  0xfb   :  { %442 = vmatprep.mubr.bf16.mxu0 %v275_v58 }
  0xfc   :  { %443 = vmatmul.mubr.bf16.vlgmr.msra.gmra.mrb[0].mxu0 %v170_v57 }
 0x1cf   :  { %v633_v6 = vpop.f32.mrb[0].mxu0 }
 0x1d0   :  { %v634_v8 = vpop.f32.mrb[1].mxu0 }
 0x1d1   :  { %v635_v9 = vadd.f32 %v634_v8, %v633_v6  ;;  %v636_v10 = vpop.f32.mrb[2].mxu0 }
 0x1d2   :  { %v637_v11 = vpop.f32.mrb[3].mxu0 }
 0x1d3   :  { %v445_v12 = vadd.f32 %v635_v9, %v313_v7 }
 0x1d5   :  { %v450_v13 = vmul.f32 0.5, %v445_v12 }
 0x1d7   :  { %715 = vtanh.f32 %v450_v13 }
 0x1e1   :  { %v716_v14 = vpop.eup %715 }
 0x1e2   :  { %v452_v19 = vadd.f32 1.0, %v716_v14 }
 0x1e4   :  { %v453_v15 = vmul.f32 0.5, %v452_v19 }
 0x1e6   :  { %v454_v16 = vmul.f32 %v453_v15, %v445_v12 }
 0x1e8   :  { %v455_v17 = vpack.c.bf16 %v454_v16, %v454_v16 }
 0x1ea   :  { %665 = vmatmul.mubr.bf16.vlgmr.msra.gmra.mrb[0].mxu1 %v455_v17 }
 0x2bd   :  { %v560_v23 = vpop.f32.mrb[0].mxu1 }
 0x2be   :  { %v561_v25 = vadd.f32 %v560_v23, %v477_v21  ;;  %v666_v26 = vpop.f32.mrb[1].mxu1 }
 0x2bf   :  { %v563_v27 = vpop.f32.mrb[2].mxu1 }
 0x2c0   :  { %v566_v28 = vpack.c.bf16 %v561_v25, %v561_v25  ;;  %v667_v29 = vpop.f32.mrb[3].mxu1 }
 0x2c2   :  { %567 = vst [vmem:[#allocation7] sm:$0xf] %v566_v28 }
 0x2c3   :  { %772 = shalt.err (!%p769_p6)
}
 0x2c4   :  { %s773_s30 = scalar_lea.hbm %s922_s6, 64 }
 0x2c5   :  { %p774_p7 = scmp.ne.s32.totalorder %s922_s6, %s773_s30  ;;  %p777_p8 = scmp.lt.u32.totalorder %s773_s30, %s922_s6 }
 0x2c7   :  { %p779_p9 = pnand %p777_p8, %p774_p7 }
 0x2c9   :  { %782 = shalt.err (!%p779_p9)
}
 0x2ca   :  { %577 = dma.vmem_to_hbm [thread:$0]  %s575_s27, 64, %s922_s6, [#allocation4]  }
 0x2cb   :  { %787 = dma.done.wait [#allocation4], 64  }
 0x2cc   :  { %788 = vsyncadd [#allocation4], 4294967232 }
 0x2cd   :  { %581 = vsyncpa [#allocation3], 1 }
 0x2ce   :  { %582 = vsyncpa [#allocation6], 1 }
 0x2cf   :  { %583 = vsyncpa [#allocation4], 1 }

</bundles_post_ra>
